<compile_context>
chip_gen: v5e
topology: v5e:2x2
jax: 0.10.0
libtpu: 0.0.40
codegen_flags: <defaults>
</compile_context>

<pallas_src>
import functools

import jax
import jax.numpy as jnp
from jax.experimental import pallas as pl
from jax.experimental.pallas import tpu as pltpu


# ----------------------------- VMEM budgeting ---------------------------------
def _vmem_limit_bytes():
    """~75% of physical VMEM: 48 MiB on v7x, 96 MiB on v5e/v6e."""
    cap = 64 * 1024 * 1024  # conservative fallback (v7x)
    try:
        cap = int(pltpu.get_tpu_info().vmem_capacity_bytes)
    except Exception:
        pass
    return (cap * 3) // 4


def _choose_l_tile(B, C, L, itemsize, per_block_budget):
    """Largest multiple of 128 dividing L with B*C*lt*itemsize <= budget."""
    assert L % 128 == 0
    bytes_per_lane = max(1, B * C * itemsize)
    max_lanes = max(128, per_block_budget // bytes_per_lane)
    lt = min(L, (max_lanes // 128) * 128)
    lt = max(lt, 128)
    while L % lt != 0:
        lt -= 128
    return lt


# ----------------------------- Fused (VMEM-resident) path ---------------------
def _fused_kernel(x_ref, w1_ref, w2_ref, o_ref, *, mode):
    x = x_ref[...]                                           # (B, C, L)
    if mode == "avg":
        v = jnp.mean(x.astype(jnp.float32), axis=-1)          # (B, C) f32
    else:
        v = jnp.max(x, axis=-1).astype(jnp.float32)           # (B, C) f32
    h = jnp.maximum(
        jnp.dot(v, w1_ref[...].astype(jnp.float32),
                preferred_element_type=jnp.float32), 0.0)     # (B, H)
    g = jax.nn.sigmoid(
        jnp.dot(h, w2_ref[...].astype(jnp.float32),
                preferred_element_type=jnp.float32))          # (B, C)
    o_ref[...] = (x.astype(jnp.float32) * g[:, :, None]).astype(o_ref.dtype)


# ----------------------------- Pass 1: partial pooling ------------------------
def _partial_pool_kernel(x_ref, p_ref, acc_ref, *, mode):
    # x_ref: (B, C, lt)   p_ref: (1, B, C) f32   acc_ref: (B, C) f32 scratch
    i = pl.program_id(1)

    # Per-tile cross-lane reduce (XLU) -> tiny (B, C) accumulator; no full-tile
    # f32 accumulator read-modify-write in the hot loop.
    if mode == "avg":
        r = jnp.sum(x_ref[...].astype(jnp.float32), axis=-1)
    else:
        r = jnp.max(x_ref[...], axis=-1).astype(jnp.float32)

    @pl.when(i == 0)
    def _():
        acc_ref[...] = r

    @pl.when(i > 0)
    def _():
        if mode == "avg":
            acc_ref[...] = acc_ref[...] + r
        else:
            acc_ref[...] = jnp.maximum(acc_ref[...], r)

    @pl.when(i == pl.num_programs(1) - 1)
    def _():
        p_ref[...] = acc_ref[...][None]


# ----------------------------- Pass 2: rescale ---------------------------------
def _scale_kernel(x_ref, g_ref, o_ref):
    # x_ref: (B, C, lt)   g_ref: (B, C) f32 resident gate   o_ref: (B, C, lt)
    g = g_ref[...]
    o_ref[...] = (x_ref[...].astype(jnp.float32) * g[:, :, None]).astype(o_ref.dtype)


# ----------------------------- Wrapper -----------------------------------------
def squeeze_excite_pallas(x, w1, w2, mode="avg", l_tile=None, use_fused=None):
    """x: (B, C, L); w1: (C, C//ratio); w2: (C//ratio, C); mode in {avg, max}."""
    assert mode in ("avg", "max")
    B, C, L = x.shape
    H = w1.shape[1]
    assert w1.shape == (C, H) and w2.shape == (H, C)

    itemsize = jnp.dtype(x.dtype).itemsize
    vmem_limit = _vmem_limit_bytes()
    x_bytes = B * C * L * itemsize

    if use_fused is None:
        # x + output resident plus small headroom must fit well inside the limit.
        use_fused = (2 * x_bytes + (1 << 20)) <= vmem_limit // 2

    if use_fused:
        return pl.pallas_call(
            functools.partial(_fused_kernel, mode=mode),
            out_shape=jax.ShapeDtypeStruct((B, C, L), x.dtype),
            compiler_params=pltpu.CompilerParams(vmem_limit_bytes=vmem_limit),
        )(x, w1, w2)

    # ---- Two-pass tiled path ----
    # Pad L to a multiple of 128 (zeros for avg, -inf for max) instead of a
    # full-extent block.
    Lp, xp = L, x
    if L % 128 != 0:
        Lp = ((L + 127) // 128) * 128
        pad_val = 0.0 if mode == "avg" else -jnp.inf
        xp = jnp.pad(x, ((0, 0), (0, 0), (0, Lp - L)), constant_values=pad_val)

    # ~8 MiB lane-dense blocks; pass 2 keeps in+out double-buffered (4 copies)
    # safely under the generation-aware limit.
    block_budget = min(vmem_limit // 6, 8 * 1024 * 1024)
    lt = _choose_l_tile(B, C, Lp, itemsize, block_budget) if l_tile is None else l_tile
    assert Lp % lt == 0 and lt % 128 == 0
    n_l = Lp // lt

    # Megacore split of the reduction (helps on v7x; harmless elsewhere).
    n_outer = 2 if (n_l >= 2 and n_l % 2 == 0) else 1
    n_inner = n_l // n_outer

    partials = pl.pallas_call(
        functools.partial(_partial_pool_kernel, mode=mode),
        out_shape=jax.ShapeDtypeStruct((n_outer, B, C), jnp.float32),
        grid_spec=pltpu.PrefetchScalarGridSpec(
            num_scalar_prefetch=0,
            grid=(n_outer, n_inner),
            in_specs=[
                pl.BlockSpec((B, C, lt), lambda o, i: (0, 0, o * n_inner + i)),
            ],
            out_specs=pl.BlockSpec((1, B, C), lambda o, i: (o, 0, 0)),
            scratch_shapes=[pltpu.VMEM((B, C), jnp.float32)],
        ),
        compiler_params=pltpu.CompilerParams(
            dimension_semantics=("parallel", "arbitrary"),
            vmem_limit_bytes=vmem_limit,
        ),
    )(xp)

    # Combine partials + tiny FC -> ReLU -> FC -> sigmoid in plain JAX (B*C elems).
    if mode == "avg":
        v = jnp.sum(partials, axis=0) * (1.0 / L)   # divide by true L
    else:
        v = jnp.max(partials, axis=0)
    h = jnp.maximum(v @ w1.astype(jnp.float32), 0.0)
    gate = jax.nn.sigmoid(h @ w2.astype(jnp.float32))        # (B, C) f32

    out = pl.pallas_call(
        _scale_kernel,
        out_shape=jax.ShapeDtypeStruct((B, C, Lp), x.dtype),
        grid_spec=pltpu.PrefetchScalarGridSpec(
            num_scalar_prefetch=0,
            grid=(n_l,),
            in_specs=[
                pl.BlockSpec((B, C, lt), lambda l: (0, 0, l)),
                pl.BlockSpec((B, C), lambda l: (0, 0)),       # gate stays resident
            ],
            out_specs=pl.BlockSpec((B, C, lt), lambda l: (0, 0, l)),
        ),
        compiler_params=pltpu.CompilerParams(
            dimension_semantics=("parallel",),
            vmem_limit_bytes=vmem_limit,
        ),
    )(xp, gate)

    if Lp != L:
        out = out[:, :, :L]
    return out


# ----------------------------- Reference & test --------------------------------
def squeeze_excite_ref(x, w1, w2, mode="avg"):
    """Pure-JAX reference matching the PyTorch forward."""
    if mode == "avg":
        v = jnp.mean(x, axis=-1)
    else:
        v = jnp.max(x, axis=-1)
    h = jnp.maximum(v @ w1, 0.0)
    s = jax.nn.sigmoid(h @ w2)
    return x * s[:, :, None]


if __name__ == "__main__":
    # Small shapes consistent with the module: x is (batch, channels, length).
    B, C, L, ratio = 2, 32, 512, 4
    H = C // ratio

    key = jax.random.PRNGKey(0)
    kx, k1, k2 = jax.random.split(key, 3)
    x = jax.random.normal(kx, (B, C, L), dtype=jnp.float32)
    w1 = jax.random.normal(k1, (C, H), dtype=jnp.float32) * 0.1
    w2 = jax.random.normal(k2, (H, C), dtype=jnp.float32) * 0.1

    ok = True
    for mode in ("avg", "max"):
        ref = squeeze_excite_ref(x, w1, w2, mode=mode)

        # Fused VMEM-resident fast path (auto-selected at this size).
        out = jax.block_until_ready(squeeze_excite_pallas(x, w1, w2, mode=mode))
        ok &= bool(jnp.allclose(out, ref, atol=1e-5, rtol=1e-5))

        # Two-pass tiled path with explicit small tiles to exercise the
        # init / accumulate / finalize reduction and the rescale pass
        # (n_l=4 -> megacore split n_outer=2, n_inner=2).
        out = jax.block_until_ready(
            squeeze_excite_pallas(x, w1, w2, mode=mode, use_fused=False, l_tile=128))
        ok &= bool(jnp.allclose(out, ref, atol=1e-5, rtol=1e-5))

    # Unaligned L exercises the padding path of the tiled pipeline.
    x2 = jax.random.normal(kx, (B, C, 320), dtype=jnp.float32)
    for mode in ("avg", "max"):
        ref2 = squeeze_excite_ref(x2, w1, w2, mode=mode)
        out2 = jax.block_until_ready(
            squeeze_excite_pallas(x2, w1, w2, mode=mode, use_fused=False))
        ok &= bool(jnp.allclose(out2, ref2, atol=1e-5, rtol=1e-5))

    if ok:
        print("KERNEL_OK")
</pallas_src>

<mosaic_0001>
module attributes {stable_mosaic.version = 11 : i64} {
  func.func @_fused_kernel(%arg0: memref<2x32x512xf32, #tpu.memory_space<vmem>>, %arg1: memref<32x8xf32, #tpu.memory_space<vmem>>, %arg2: memref<8x32xf32, #tpu.memory_space<vmem>>, %arg3: memref<2x32x512xf32, #tpu.memory_space<vmem>>) attributes {dimension_semantics = [], scalar_prefetch = 0 : i64, scratch_operands = 0 : i64, tpu.core_type = #tpu.core_type<tc>} {
    %c0 = arith.constant 0 : index
    %c0_0 = arith.constant 0 : index
    %c0_1 = arith.constant 0 : index
    %0 = vector.load %arg0[%c0, %c0_0, %c0_1] : memref<2x32x512xf32, #tpu.memory_space<vmem>>, vector<2x32x512xf32>
    %cst = arith.constant dense<0.000000e+00> : vector<2x32xf32>
    %1 = vector.multi_reduction <add>, %0, %cst [2] : vector<2x32x512xf32> to vector<2x32xf32>
    %cst_2 = arith.constant 5.120000e+02 : f32
    %2 = vector.broadcast %cst_2 : f32 to vector<2x32xf32>
    %3 = arith.divf %1, %2 : vector<2x32xf32>
    %c0_3 = arith.constant 0 : index
    %c0_4 = arith.constant 0 : index
    %4 = vector.load %arg1[%c0_3, %c0_4] : memref<32x8xf32, #tpu.memory_space<vmem>>, vector<32x8xf32>
    %cst_5 = arith.constant dense<0.000000e+00> : vector<2x8xf32>
    %5 = tpu.matmul %3, %4, %cst_5 {dimension_numbers = #tpu.dot_dimension_numbers<[1], [0], [0], [1], [0, 0, 1, 1], [], []>} : vector<2x32xf32>, vector<32x8xf32>, vector<2x8xf32> -> vector<2x8xf32>
    %cst_6 = arith.constant 0.000000e+00 : f32
    %6 = vector.broadcast %cst_6 : f32 to vector<2x8xf32>
    %7 = arith.maximumf %5, %6 : vector<2x8xf32>
    %c0_7 = arith.constant 0 : index
    %c0_8 = arith.constant 0 : index
    %8 = vector.load %arg2[%c0_7, %c0_8] : memref<8x32xf32, #tpu.memory_space<vmem>>, vector<8x32xf32>
    %cst_9 = arith.constant dense<0.000000e+00> : vector<2x32xf32>
    %9 = tpu.matmul %7, %8, %cst_9 {dimension_numbers = #tpu.dot_dimension_numbers<[1], [0], [0], [1], [0, 0, 1, 1], [], []>} : vector<2x8xf32>, vector<8x32xf32>, vector<2x32xf32> -> vector<2x32xf32>
    %10 = arith.negf %9 : vector<2x32xf32>
    %11 = math.exp %10 : vector<2x32xf32>
    %cst_10 = arith.constant 1.000000e+00 : f32
    %12 = vector.broadcast %cst_10 : f32 to vector<2x32xf32>
    %13 = arith.addf %12, %11 : vector<2x32xf32>
    %14 = arith.divf %12, %13 : vector<2x32xf32>
    %15 = vector.shape_cast %14 : vector<2x32xf32> to vector<2x32x1xf32>
    %16 = vector.broadcast %15 : vector<2x32x1xf32> to vector<2x32x512xf32>
    %17 = arith.mulf %0, %16 : vector<2x32x512xf32>
    %c0_11 = arith.constant 0 : index
    %c0_12 = arith.constant 0 : index
    %c0_13 = arith.constant 0 : index
    %18 = vector.load %arg3[%c0_11, %c0_12, %c0_13] : memref<2x32x512xf32, #tpu.memory_space<vmem>>, vector<2x32x512xf32>
    tpu.vector_store %arg3[%c0_11, %c0_12, %c0_13], %17 {strides = array<i32>} : memref<2x32x512xf32, #tpu.memory_space<vmem>>, vector<2x32x512xf32>,
    return
  }
}

</mosaic_0001>

<bundles_post_ra>
// kernel: tpu_custom_call.1
= control target key start
LH: loop header
LB: loop body
LE: loop exit
PB: predicated region body
PF: predicated region fallthrough
CT: control target
= control target key end

     0   :  { %8 = vsyncpa [#allocation3], 0  ;;  %s610_s0 = inlined_call_operand.hbm [shape: f32[2,32,512], index: 0, kind: input, shape index: {}]   ;;  %s611_s1 = inlined_call_operand.vmem [shape: f32[32,8], index: 1, kind: input, shape index: {}]   ;;  %s612_s2 = inlined_call_operand.vmem [shape: f32[8,32], index: 2, kind: input, shape index: {}]   ;;  %s613_s3 = inlined_call_operand.hbm [shape: f32[2,32,512], index: 3, kind: output, shape index: {}]  }
   0x1   :  { %9 = vsyncpa [#allocation4], 0  ;;  %s14_s14 = sshll.u32 %s610_s0, 4  ;;  %s430_s15 = smov [#allocation2]   ;;  %s15_s14 = int_to_ptr.hbm [resolvable:$true] %s14_s14 }
   0x2   :  { %s16_s16 = sshll.u32 %s430_s15, 4  ;;  %s431_s17 = smov 512   ;;  %s17_s16 = int_to_ptr.vmem [resolvable:$true] %s16_s16 }
   0x3   :  { %s432_s18 = smov 32  }
   0x4   :  { %22 = dma.hbm_to_vmem [thread:$0]  %s15_s14, 4096, %s17_s16, [#allocation3], %s431_s17, %s431_s17, %s432_s18  }
   0x5   :  { %426 = dma.done.wait [#allocation3], 4096  }
   0x6   :  { %427 = vsyncadd [#allocation3], 4294963200  ;;  %v461_v0 = vld [vmem:[#allocation2 + $0x80] sm:$0xff]  ;;  %v463_v1 = vld [vmem:[#allocation2 + $0x88] sm:$0xff]  ;;  %v433_v57 = vmov 512.0   ;;  %vm135_vm1 = vcmask 130112  }
   0x7   :  { %v465_v2 = vld [vmem:[#allocation2 + $0x90] sm:$0xff]  ;;  %v83_v3 = vadd.f32 %v463_v1, %v461_v0  ;;  %v469_v4 = vld [vmem:[#allocation2] sm:$0xff]  ;;  %v471_v5 = vld [vmem:[#allocation2 + $0x8] sm:$0xff]  ;;  %372 = vrcp.f32 %v433_v57  ;;  %vm139_vm2 = vcmask 195712   ;;  %vm143_vm3 = vcmask 261312   ;;  %s342_s30 = sshll.u32 %s613_s3, 4  ;;  %s343_s30 = int_to_ptr.hbm [resolvable:$true] %s342_s30 }
   0x8   :  { %v473_v6 = vld [vmem:[#allocation2 + $0x98] sm:$0xff]  ;;  %v475_v7 = vld [vmem:[#allocation2 + $0x10] sm:$0xff]  ;;  %v63_v8 = vadd.f32 %v471_v5, %v469_v4  ;;  %v479_v9 = vld [vmem:[#allocation2 + $0x40] sm:$0xff]  ;;  %vm152_vm4 = vcmask 1041409   ;;  %vm154_vm5 = vcmask 261120   ;;  %vm179_vm6 = vcmask 64512  }
   0x9   :  { %v84_v10 = vadd.f32 %v83_v3, %v465_v2  ;;  %v482_v11 = vld [vmem:[#allocation2 + $0x18] sm:$0xff]  ;;  %v484_v12 = vld [vmem:[#allocation2 + $0x48] sm:$0xff]  ;;  %v486_v13 = vld [vmem:[#allocation2 + $0x50] sm:$0xff] }
   0xa   :  { %v64_v14 = vadd.f32 %v63_v8, %v475_v7  ;;  %v73_v15 = vadd.f32 %v484_v12, %v479_v9  ;;  %v491_v16 = vld [vmem:[#allocation2 + $0xa0] sm:$0xff]  ;;  %v493_v17 = vld [vmem:[#allocation2 + $0xa8] sm:$0xff]  ;;  %v495_v18 = vld [vmem:[#allocation2 + $0xb0] sm:$0xff] }
   0xb   :  { %v85_v19 = vadd.f32 %v84_v10, %v473_v6  ;;  %v498_v20 = vld [vmem:[#allocation2 + $0x58] sm:$0xff]  ;;  %v88_v21 = vadd.f32 %v493_v17, %v491_v16  ;;  %v502_v22 = vld [vmem:[#allocation2 + $0x20] sm:$0xff]  ;;  %v504_v23 = vld [vmem:[#allocation2 + $0x28] sm:$0xff] }
   0xc   :  { %v65_v24 = vadd.f32 %v64_v14, %v482_v11  ;;  %v74_v25 = vadd.f32 %v73_v15, %v486_v13  ;;  %v508_v26 = vld [vmem:[#allocation2 + $0x30] sm:$0xff]  ;;  %v68_v27 = vadd.f32 %v504_v23, %v502_v22  ;;  %v512_v28 = vld [vmem:[#allocation2 + $0xc0] sm:$0xff]  ;;  %v515_v30 = vld [vmem:[#allocation2 + $0xc8] sm:$0xff]  ;;  %v130_v14 = vlaneseq }
   0xd   :  { %86 = vadd.xlane.f32.xlu1 %v85_v19  ;;  %v89_v29 = vadd.f32 %v88_v21, %v495_v18  ;;  %v517_v31 = vld [vmem:[#allocation2 + $0xd0] sm:$0xff]  ;;  %v520_v33 = vld [vmem:[#allocation2 + $0xb8] sm:$0xff]  ;;  %v93_v35 = vadd.f32 %v515_v30, %v512_v28  ;;  %v525_v36 = vld [vmem:[#allocation2 + $0xe0] sm:$0xff]  ;;  %v373_v60 = vpop.eup %372 }
   0xe   :  { %66 = vadd.xlane.f32.xlu0 %v65_v24  ;;  %v75_v32 = vadd.f32 %v74_v25, %v498_v20  ;;  %v69_v34 = vadd.f32 %v68_v27, %v508_v26  ;;  %v527_v37 = vld [vmem:[#allocation2 + $0xe8] sm:$0xff]  ;;  %v529_v38 = vld [vmem:[#allocation2 + $0x38] sm:$0xff]  ;;  %v531_v39 = vld [vmem:[#allocation2 + $0x60] sm:$0xff]  ;;  %v104_v62 = vmul.f32 512.0, %v373_v60  ;;  %vm108_vm0 = vweird.f32 %v373_v60 }
   0xf   :  { %v533_v40 = vld [vmem:[#allocation2 + $0x68] sm:$0xff]  ;;  %v94_v41 = vadd.f32 %v93_v35, %v517_v31  ;;  %v90_v42 = vadd.f32 %v89_v29, %v520_v33  ;;  %v537_v43 = vld [vmem:[#allocation2 + $0xd8] sm:$0xff]  ;;  %v98_v44 = vadd.f32 %v527_v37, %v525_v36  ;;  %v542_v46 = vld [vmem:[#allocation2 + $0xf0] sm:$0xff]  ;;  %v131_v21 = vand.u32 127, %v130_v14 }
  0x10   :  { %76 = vadd.xlane.f32.xlu2 %v75_v32  ;;  %v70_v45 = vadd.f32 %v69_v34, %v529_v38  ;;  %v78_v47 = vadd.f32 %v533_v40, %v531_v39  ;;  %v546_v48 = vld [vmem:[#allocation2 + $0x70] sm:$0xff]  ;;  %v550_v51 = vld [vmem:[#allocation2 + $0xf8] sm:$0xff]  ;;  %v119_v59 = vld [vmem:[%s611_s1 + $0x8] sm:$0xff]  ;;  %v105_v63 = vsub.f32 1.0, %v104_v62 }
  0x11   :  { %v95_v49 = vadd.f32 %v94_v41, %v537_v43  ;;  %v99_v50 = vadd.f32 %v98_v44, %v542_v46  ;;  %v553_v53 = vld [vmem:[#allocation2 + $0x78] sm:$0xff]  ;;  %v120_v58 = vld [vmem:[%s611_s1 + $0x10] sm:$0xff]  ;;  %v118_v61 = vld [vmem:[%s611_s1] sm:$0xff]  ;;  %v133_v27 = vadd.s32 4294967288, %v131_v21 }
  0x12   :  { %v79_v52 = vadd.f32 %v78_v47, %v546_v48  ;;  %v121_v56 = vld [vmem:[%s611_s1 + $0x18] sm:$0xff]  ;;  %v106_v3 = vmul.f32 %v373_v60, %v105_v63  ;;  %v137_v47 = vadd.s32 4294967280, %v131_v21 }
  0x13   :  { %v100_v54 = vadd.f32 %v99_v50, %v550_v51  ;;  %169 = vmatpush.msra.mxu0 %v121_v56 }
  0x14   :  { %v80_v55 = vadd.f32 %v79_v52, %v553_v53  ;;  %v107_v19 = vadd.f32 %v373_v60, %v106_v3 }
  0x15   :  { %91 = vadd.xlane.f32.xlu1 %v90_v42  ;;  %170 = vmatpush.msra.mxu0 %v120_v58 }
  0x16   :  { %71 = vadd.xlane.f32.xlu0 %v70_v45  ;;  %v109_v24 = vsel %vm108_vm0, %v373_v60, %v107_v19 }
  0x17   :  { %171 = vmatpush.msra.mxu0 %v119_v59 }
  0x18   :  { %96 = vadd.xlane.f32.xlu2 %v95_v49 }
  0x19   :  { %172 = vmatpush.msra.mxu0 %v118_v61 }
  0x1d   :  { %101 = vadd.xlane.f32.xlu1 %v100_v54  ;;  %v141_v54 = vadd.s32 4294967272, %v131_v21 }
  0x1e   :  { %81 = vadd.xlane.f32.xlu0 %v80_v55 }
  0x80   :  { %v87_v8 = vpop.xlane.xlu1 %86 }
  0x81   :  { %v67_v10 = vpop.xlane.xlu0 %66  ;;  %v114_v35 = vmul.f32 %v109_v24, %v87_v8 }
  0x82   :  { %v110_v42 = vmul.f32 %v109_v24, %v67_v10 }
  0x83   :  { %v77_v15 = vpop.xlane.xlu2 %76  ;;  %v145_v50 = vperm.slane %v114_v35, %v131_v21 }
  0x84   :  { %v112_v52 = vmul.f32 %v109_v24, %v77_v15  ;;  %v132_v55 = vperm.slane %v110_v42, %v131_v21  ;;  %v178_v21 = vld [vmem:[%s612_s2] sm:$0xff]  ;;  %s434_s2 = smov [#allocation5]  }
  0x85   :  { %198 = vmatpush.msra.mxu1 %v178_v21  ;;  %s340_s27 = sshll.u32 %s434_s2, 4  ;;  %s341_s27 = int_to_ptr.vmem [resolvable:$true] %s340_s27 }
  0x86   :  { %v138_v63 = vperm.slane %v112_v52, %v137_v47 }
  0x88   :  { %v92_v25 = vpop.xlane.xlu1 %91 }
  0x89   :  { %v115_v29 = vmul.f32 %v109_v24, %v92_v25  ;;  %v72_v32 = vpop.xlane.xlu0 %71 }
  0x8a   :  { %v111_v34 = vmul.f32 %v109_v24, %v72_v32  ;;  %v224_v32 = vshrl.u32 %v130_v14, 7 }
  0x8b   :  { %v97_v41 = vpop.xlane.xlu2 %96  ;;  %v146_v45 = vperm.slane %v115_v29, %v133_v27 }
  0x8c   :  { %v116_v44 = vmul.f32 %v109_v24, %v97_v41  ;;  %v134_v49 = vperm.slane %v111_v34, %v133_v27  ;;  %363 = vset.pattern.permute.xlu2 %v224_v32  ;;  %v237_v34 = vadd.s32 16, %v224_v32  ;;  %v231_v35 = vadd.s32 8, %v224_v32 }
  0x8d   :  { %v147_v58 = vsel %vm135_vm1, %v146_v45, %v145_v50 }
  0x8e   :  { %v148_v56 = vperm.slane %v116_v44, %v137_v47  ;;  %v136_v61 = vsel %vm135_vm1, %v134_v49, %v132_v55  ;;  %365 = vset.pattern.permute.xlu1 %v237_v34  ;;  %364 = vset.pattern.permute.xlu0 %v231_v35 }
  0x8f   :  { %v140_v19 = vsel %vm139_vm2, %v138_v63, %v136_v61 }
  0x90   :  { %v102_v57 = vpop.xlane.xlu1 %101  ;;  %v149_v10 = vsel %vm139_vm2, %v148_v56, %v147_v58 }
  0x91   :  { %v117_v59 = vmul.f32 %v109_v24, %v102_v57  ;;  %v82_v60 = vpop.xlane.xlu0 %81 }
  0x92   :  { %v113_v62 = vmul.f32 %v109_v24, %v82_v60  ;;  %v243_v60 = vadd.s32 24, %v224_v32 }
  0x93   :  { %v150_v3 = vperm.slane %v117_v59, %v141_v54 }
  0x94   :  { %v142_v8 = vperm.slane %v113_v62, %v141_v54 }
  0x95   :  { %v151_v25 = vsel %vm143_vm3, %v150_v3, %v149_v10 }
  0x96   :  { %v144_v15 = vsel %vm143_vm3, %v142_v8, %v140_v19 }
  0x97   :  { %v153_v27 = vsel %vm152_vm4, %v151_v25, %v144_v15 }
  0x98   :  { %355 = vmatmul.msk.f32.vlgmr.msra.gmra.mxu0 %vm154_vm5, %v153_v27 }
 0x115   :  { %v174_v29 = vpop.f32.mrf.mxu0 }
 0x116   :  { %v177_v24 = vmax.f32 %v174_v29, 0.0 }
 0x118   :  { %356 = vmatmul.msk.f32.vlgmr.msra.gmra.mxu1 %vm179_vm6, %v177_v24 }
 0x195   :  { %v200_v41 = vpop.f32.mrf.mxu1 }
 0x196   :  { %v357_v42 = vmul.f32 -1.442695, %v200_v41 }
 0x198   :  { %374 = vpow2.f32 %v357_v42 }
 0x19e   :  { %v375_v44 = vpop.eup %374 }
 0x19f   :  { %v206_v45 = vadd.f32 1.0, %v375_v44 }
 0x1a1   :  { %376 = vrcp.f32 %v206_v45  ;;  %v218_v52 = vand.u32 2147483648, %v206_v45  ;;  %v216_v55 = vand.u32 2147483647, %v206_v45  ;;  %vm212_vm8 = vweird.f32 %v206_v45 }
 0x1a3   :  { %v219_v14 = vor.u32 1.1754944e-38, %v218_v52  ;;  %vm217_vm10 = vcmp.eq.f32.partialorder %v216_v55, 8.507059e+37 }
 0x1a7   :  { %v377_v47 = vpop.eup %376 }
 0x1a8   :  { %v208_v49 = vmul.f32 %v377_v47, %v206_v45  ;;  %vm213_vm7 = vweird.f32 %v377_v47 }
 0x1a9   :  { %vm214_vm9 = vmor %vm212_vm8, %vm213_vm7 }
 0x1aa   :  { %v209_v50 = vsub.f32 1.0, %v208_v49 }
 0x1ac   :  { %v210_v54 = vmul.f32 %v377_v47, %v209_v50 }
 0x1ae   :  { %v211_v56 = vadd.f32 %v377_v47, %v210_v54 }
 0x1b0   :  { %v215_v57 = vsel %vm214_vm9, %v377_v47, %v211_v56 }
 0x1b1   :  { %v220_v58 = vsel %vm217_vm10, %v219_v14, %v215_v57 }
 0x1b2   :  { %v222_v59 = vperm.slane %v220_v58, 0  ;;  %v247_v61 = vperm.slane %v220_v58, 1 }
 0x1b4   :  { %239 = vperm.xlu1 %365, %v222_v59   ;;  %233 = vperm.xlu0 %364, %v222_v59  }
 0x1b5   :  { %227 = vperm.xlu2 %363, %v222_v59  }
 0x1bc   :  { %368 = vset.pattern.permute.xlu1 %v231_v35  ;;  %371 = vset.pattern.permute.xlu0 %v243_v60 }
 0x1bd   :  { %366 = vset.pattern.permute.xlu2 %v243_v60 }
 0x1c4   :  { %258 = vperm.xlu1 %368, %v247_v61  }
 0x1c5   :  { %245 = vperm.xlu2 %366, %v222_v59  }
 0x1cc   :  { %370 = vset.pattern.permute.xlu1 %v243_v60 }
 0x1cd   :  { %367 = vset.pattern.permute.xlu2 %v224_v32 }
 0x1d4   :  { %270 = vperm.xlu1 %370, %v247_v61  }
 0x1d5   :  { %252 = vperm.xlu2 %367, %v247_v61  }
 0x1dd   :  { %369 = vset.pattern.permute.xlu2 %v237_v34 }
 0x1e5   :  { %264 = vperm.xlu2 %369, %v247_v61  }
 0x20f   :  { %v228_v62 = vpop.permute.xlu2 %227 }
 0x210   :  { %v272_v63 = vmul.f32 %v228_v62, %v469_v4  ;;  %v273_v3 = vmul.f32 %v228_v62, %v471_v5  ;;  %v274_v8 = vmul.f32 %v228_v62, %v475_v7  ;;  %v275_v10 = vmul.f32 %v228_v62, %v482_v11 }
 0x212   :  { %304 = vst [vmem:[#allocation5] sm:$0xff] %v272_v63 }
 0x213   :  { %305 = vst [vmem:[#allocation5 + $0x8] sm:$0xff] %v273_v3 }
 0x214   :  { %306 = vst [vmem:[#allocation5 + $0x10] sm:$0xff] %v274_v8 }
 0x215   :  { %307 = vst [vmem:[#allocation5 + $0x18] sm:$0xff] %v275_v10 }
 0x21f   :  { %v246_v19 = vpop.permute.xlu2 %245 }
 0x220   :  { %v284_v25 = vmul.f32 %v246_v19, %v531_v39  ;;  %v285_v15 = vmul.f32 %v246_v19, %v533_v40  ;;  %v286_v27 = vmul.f32 %v246_v19, %v546_v48  ;;  %v287_v21 = vmul.f32 %v246_v19, %v553_v53 }
 0x222   :  { %316 = vst [vmem:[#allocation5 + $0x60] sm:$0xff] %v284_v25 }
 0x223   :  { %317 = vst [vmem:[#allocation5 + $0x68] sm:$0xff] %v285_v15 }
 0x224   :  { %318 = vst [vmem:[#allocation5 + $0x70] sm:$0xff] %v286_v27 }
 0x225   :  { %319 = vst [vmem:[#allocation5 + $0x78] sm:$0xff] %v287_v21 }
 0x226   :  { %v240_v4 = vpop.permute.xlu1 %239  ;;  %v234_v5 = vpop.permute.xlu0 %233 }
 0x227   :  { %v280_v7 = vmul.f32 %v240_v4, %v479_v9  ;;  %v281_v11 = vmul.f32 %v240_v4, %v484_v12  ;;  %v282_v29 = vmul.f32 %v240_v4, %v486_v13  ;;  %v283_v39 = vmul.f32 %v240_v4, %v498_v20 }
 0x228   :  { %v276_v40 = vmul.f32 %v234_v5, %v502_v22  ;;  %v277_v48 = vmul.f32 %v234_v5, %v504_v23  ;;  %v278_v53 = vmul.f32 %v234_v5, %v508_v26  ;;  %v279_v24 = vmul.f32 %v234_v5, %v529_v38 }
 0x229   :  { %312 = vst [vmem:[#allocation5 + $0x40] sm:$0xff] %v280_v7 }
 0x22a   :  { %313 = vst [vmem:[#allocation5 + $0x48] sm:$0xff] %v281_v11 }
 0x22b   :  { %314 = vst [vmem:[#allocation5 + $0x50] sm:$0xff] %v282_v29 }
 0x22c   :  { %315 = vst [vmem:[#allocation5 + $0x58] sm:$0xff] %v283_v39 }
 0x22d   :  { %308 = vst [vmem:[#allocation5 + $0x20] sm:$0xff] %v276_v40 }
 0x22e   :  { %309 = vst [vmem:[#allocation5 + $0x28] sm:$0xff] %v277_v48 }
 0x22f   :  { %310 = vst [vmem:[#allocation5 + $0x30] sm:$0xff] %v278_v53  ;;  %v253_v9 = vpop.permute.xlu2 %252 }
 0x230   :  { %311 = vst [vmem:[#allocation5 + $0x38] sm:$0xff] %v279_v24  ;;  %v288_v12 = vmul.f32 %v253_v9, %v461_v0  ;;  %v289_v13 = vmul.f32 %v253_v9, %v463_v1  ;;  %v290_v20 = vmul.f32 %v253_v9, %v465_v2  ;;  %v291_v22 = vmul.f32 %v253_v9, %v473_v6 }
 0x232   :  { %320 = vst [vmem:[#allocation5 + $0x80] sm:$0xff] %v288_v12 }
 0x233   :  { %321 = vst [vmem:[#allocation5 + $0x88] sm:$0xff] %v289_v13 }
 0x234   :  { %322 = vst [vmem:[#allocation5 + $0x90] sm:$0xff] %v290_v20 }
 0x235   :  { %323 = vst [vmem:[#allocation5 + $0x98] sm:$0xff] %v291_v22 }
 0x236   :  { %v259_v23 = vpop.permute.xlu1 %258 }
 0x237   :  { %v292_v26 = vmul.f32 %v259_v23, %v491_v16  ;;  %v293_v38 = vmul.f32 %v259_v23, %v493_v17  ;;  %v294_v32 = vmul.f32 %v259_v23, %v495_v18  ;;  %v295_v34 = vmul.f32 %v259_v23, %v520_v33 }
 0x239   :  { %324 = vst [vmem:[#allocation5 + $0xa0] sm:$0xff] %v292_v26 }
 0x23a   :  { %325 = vst [vmem:[#allocation5 + $0xa8] sm:$0xff] %v293_v38 }
 0x23b   :  { %326 = vst [vmem:[#allocation5 + $0xb0] sm:$0xff] %v294_v32 }
 0x23c   :  { %327 = vst [vmem:[#allocation5 + $0xb8] sm:$0xff] %v295_v34 }
 0x23f   :  { %v265_v0 = vpop.permute.xlu2 %264 }
 0x240   :  { %v296_v1 = vmul.f32 %v265_v0, %v512_v28  ;;  %v297_v2 = vmul.f32 %v265_v0, %v515_v30  ;;  %v298_v6 = vmul.f32 %v265_v0, %v517_v31  ;;  %v299_v35 = vmul.f32 %v265_v0, %v537_v43 }
 0x242   :  { %328 = vst [vmem:[#allocation5 + $0xc0] sm:$0xff] %v296_v1 }
 0x243   :  { %329 = vst [vmem:[#allocation5 + $0xc8] sm:$0xff] %v297_v2 }
 0x244   :  { %330 = vst [vmem:[#allocation5 + $0xd0] sm:$0xff] %v298_v6 }
 0x245   :  { %331 = vst [vmem:[#allocation5 + $0xd8] sm:$0xff] %v299_v35 }
 0x246   :  { %v271_v16 = vpop.permute.xlu1 %270 }
 0x247   :  { %v300_v17 = vmul.f32 %v271_v16, %v525_v36  ;;  %v301_v18 = vmul.f32 %v271_v16, %v527_v37  ;;  %v302_v33 = vmul.f32 %v271_v16, %v542_v46  ;;  %v303_v28 = vmul.f32 %v271_v16, %v550_v51 }
 0x249   :  { %332 = vst [vmem:[#allocation5 + $0xe0] sm:$0xff] %v300_v17 }
 0x24a   :  { %333 = vst [vmem:[#allocation5 + $0xe8] sm:$0xff] %v301_v18 }
 0x24b   :  { %334 = vst [vmem:[#allocation5 + $0xf0] sm:$0xff] %v302_v33 }
 0x24c   :  { %335 = vst [vmem:[#allocation5 + $0xf8] sm:$0xff] %v303_v28 }
 0x24d   :  { %348 = dma.vmem_to_hbm [thread:$0]  %s341_s27, 4096, %s343_s30, [#allocation4], %s431_s17, %s431_s17, %s432_s18  }
 0x24e   :  { %428 = dma.done.wait [#allocation4], 4096  }
 0x24f   :  { %429 = vsyncadd [#allocation4], 4294963200 }
 0x250   :  { %353 = vsyncpa [#allocation3], 1 }
 0x251   :  { %354 = vsyncpa [#allocation4], 1 }

</bundles_post_ra>
